<compile_context>
chip_gen: v7x
topology: tpu7x:2x2x1
jax: 0.10.0
libtpu: 0.0.40
codegen_flags: <defaults>
</compile_context>

<pallas_src>
import jax
import jax.numpy as jnp
from jax.experimental import pallas as pl
from jax.experimental.pallas import tpu as pltpu

HEAD_LANES = 128  # lane-dense width for the fused actor+critic output


def _net_kernel(x_ref, w1_ref, b1_ref, w2_ref, b2_ref, wh_ref, bh_ref, out_ref):
    # x / weights are bf16 (MXU operands); biases and accumulation are f32.
    x = x_ref[...]
    h1 = jnp.dot(x, w1_ref[...], preferred_element_type=jnp.float32) + b1_ref[...]
    h1 = jnp.maximum(h1, 0.0)
    h2 = jnp.dot(h1.astype(jnp.bfloat16), w2_ref[...],
                 preferred_element_type=jnp.float32) + b2_ref[...]
    h2 = jnp.maximum(h2, 0.0)
    # fused actor+critic head: single MXU pass, single lane-dense store
    out = jnp.dot(h2.astype(jnp.bfloat16), wh_ref[...],
                  preferred_element_type=jnp.float32) + bh_ref[...]
    out_ref[...] = out.astype(out_ref.dtype)


def net_forward(x, params):
    """x: [B, input_nums] float32. Returns (actor [B, output_nums], critic [B, 1])."""
    w1, b1, w2, b2, wa, ba, wc, bc = params
    B = x.shape[0]
    out_nums = wa.shape[1]
    n_used = out_nums + 1
    assert n_used <= HEAD_LANES

    # Fuse actor + critic heads, zero-pad to a lane-dense output width.
    head_w = jnp.pad(jnp.concatenate([wa, wc], axis=1),
                     ((0, 0), (0, HEAD_LANES - n_used)))
    head_b = jnp.pad(jnp.concatenate([ba, bc], axis=1),
                     ((0, 0), (0, HEAD_LANES - n_used)))

    # bf16 MXU operands; biases stay f32 (VPU path).
    x_bf = x.astype(jnp.bfloat16)
    w1_bf = w1.astype(jnp.bfloat16)
    w2_bf = w2.astype(jnp.bfloat16)
    wh_bf = head_w.astype(jnp.bfloat16)

    vmem = pl.BlockSpec(memory_space=pltpu.MemorySpace.VMEM)
    fused = pl.pallas_call(
        _net_kernel,
        out_shape=jax.ShapeDtypeStruct((B, HEAD_LANES), jnp.float32),
        in_specs=[vmem] * 7,
        out_specs=vmem,
    )(x_bf, w1_bf, b1, w2_bf, b2, wh_bf, head_b)

    actor = fused[:, :out_nums]
    critic = fused[:, out_nums:n_used]
    return actor, critic


def _xavier_uniform(key, fan_in, fan_out):
    # torch.nn.init.xavier_uniform_: U(-a, a), a = sqrt(6 / (fan_in + fan_out))
    bound = (6.0 / (fan_in + fan_out)) ** 0.5
    # stored as [in, out] (transposed vs. PyTorch's [out, in]) for x @ W
    return jax.random.uniform(key, (fan_in, fan_out), jnp.float32, -bound, bound)


def init_params(key, input_nums, output_nums, hidden_nums):
    k1, k2, k3, k4 = jax.random.split(key, 4)
    w1 = _xavier_uniform(k1, input_nums, hidden_nums)
    b1 = jnp.zeros((1, hidden_nums), jnp.float32)
    w2 = _xavier_uniform(k2, hidden_nums, hidden_nums)
    b2 = jnp.zeros((1, hidden_nums), jnp.float32)
    wa = _xavier_uniform(k3, hidden_nums, output_nums)
    ba = jnp.zeros((1, output_nums), jnp.float32)
    wc = _xavier_uniform(k4, hidden_nums, 1)
    bc = jnp.zeros((1, 1), jnp.float32)
    return (w1, b1, w2, b2, wa, ba, wc, bc)


def _reference(x, params):
    """Same arithmetic as the kernel (bf16 matmul operands, f32 accumulation)."""
    w1, b1, w2, b2, wa, ba, wc, bc = params
    bf = jnp.bfloat16
    h = jnp.maximum(jnp.dot(x.astype(bf), w1.astype(bf),
                            preferred_element_type=jnp.float32) + b1, 0.0)
    h = jnp.maximum(jnp.dot(h.astype(bf), w2.astype(bf),
                            preferred_element_type=jnp.float32) + b2, 0.0)
    actor = jnp.dot(h.astype(bf), wa.astype(bf),
                    preferred_element_type=jnp.float32) + ba
    critic = jnp.dot(h.astype(bf), wc.astype(bf),
                     preferred_element_type=jnp.float32) + bc
    return actor, critic


if __name__ == "__main__":
    key = jax.random.PRNGKey(0)
    batch, input_nums, output_nums, hidden_nums = 8, 16, 4, 32

    kx, kp = jax.random.split(key)
    x = jax.random.normal(kx, (batch, input_nums), jnp.float32)
    params = init_params(kp, input_nums, output_nums, hidden_nums)

    actor, critic = jax.jit(net_forward)(x, params)
    jax.block_until_ready((actor, critic))

    actor_ref, critic_ref = _reference(x, params)
    assert actor.shape == (batch, output_nums)
    assert critic.shape == (batch, 1)
    assert jnp.allclose(actor, actor_ref, atol=1e-3, rtol=1e-3)
    assert jnp.allclose(critic, critic_ref, atol=1e-3, rtol=1e-3)

    print("KERNEL_OK")
</pallas_src>

<mosaic_0001>
module attributes {stable_mosaic.version = 11 : i64} {
  func.func @_net_kernel(%arg0: memref<8x16xbf16, #tpu.memory_space<vmem>>, %arg1: memref<16x32xbf16, #tpu.memory_space<vmem>>, %arg2: memref<1x32xf32, #tpu.memory_space<vmem>>, %arg3: memref<32x32xbf16, #tpu.memory_space<vmem>>, %arg4: memref<1x32xf32, #tpu.memory_space<vmem>>, %arg5: memref<32x128xbf16, #tpu.memory_space<vmem>>, %arg6: memref<1x128xf32, #tpu.memory_space<vmem>>, %arg7: memref<8x128xf32, #tpu.memory_space<vmem>>) attributes {dimension_semantics = [], scalar_prefetch = 0 : i64, scratch_operands = 0 : i64, tpu.core_type = #tpu.core_type<tc>} {
    %c0 = arith.constant 0 : index
    %c0_0 = arith.constant 0 : index
    %0 = vector.load %arg0[%c0, %c0_0] : memref<8x16xbf16, #tpu.memory_space<vmem>>, vector<8x16xbf16>
    %c0_1 = arith.constant 0 : index
    %c0_2 = arith.constant 0 : index
    %1 = vector.load %arg1[%c0_1, %c0_2] : memref<16x32xbf16, #tpu.memory_space<vmem>>, vector<16x32xbf16>
    %cst = arith.constant dense<0.000000e+00> : vector<8x32xf32>
    %2 = tpu.matmul %0, %1, %cst {dimension_numbers = #tpu.dot_dimension_numbers<[1], [0], [0], [1], [0, 0, 1, 1], [], []>} : vector<8x16xbf16>, vector<16x32xbf16>, vector<8x32xf32> -> vector<8x32xf32>
    %c0_3 = arith.constant 0 : index
    %c0_4 = arith.constant 0 : index
    %3 = vector.load %arg2[%c0_3, %c0_4] : memref<1x32xf32, #tpu.memory_space<vmem>>, vector<1x32xf32>
    %4 = vector.broadcast %3 : vector<1x32xf32> to vector<8x32xf32>
    %5 = arith.addf %2, %4 : vector<8x32xf32>
    %cst_5 = arith.constant 0.000000e+00 : f32
    %6 = vector.broadcast %cst_5 : f32 to vector<8x32xf32>
    %7 = arith.maximumf %5, %6 : vector<8x32xf32>
    %8 = arith.truncf %7 : vector<8x32xf32> to vector<8x32xbf16>
    %c0_6 = arith.constant 0 : index
    %c0_7 = arith.constant 0 : index
    %9 = vector.load %arg3[%c0_6, %c0_7] : memref<32x32xbf16, #tpu.memory_space<vmem>>, vector<32x32xbf16>
    %cst_8 = arith.constant dense<0.000000e+00> : vector<8x32xf32>
    %10 = tpu.matmul %8, %9, %cst_8 {dimension_numbers = #tpu.dot_dimension_numbers<[1], [0], [0], [1], [0, 0, 1, 1], [], []>} : vector<8x32xbf16>, vector<32x32xbf16>, vector<8x32xf32> -> vector<8x32xf32>
    %c0_9 = arith.constant 0 : index
    %c0_10 = arith.constant 0 : index
    %11 = vector.load %arg4[%c0_9, %c0_10] : memref<1x32xf32, #tpu.memory_space<vmem>>, vector<1x32xf32>
    %12 = vector.broadcast %11 : vector<1x32xf32> to vector<8x32xf32>
    %13 = arith.addf %10, %12 : vector<8x32xf32>
    %cst_11 = arith.constant 0.000000e+00 : f32
    %14 = vector.broadcast %cst_11 : f32 to vector<8x32xf32>
    %15 = arith.maximumf %13, %14 : vector<8x32xf32>
    %16 = arith.truncf %15 : vector<8x32xf32> to vector<8x32xbf16>
    %c0_12 = arith.constant 0 : index
    %c0_13 = arith.constant 0 : index
    %17 = vector.load %arg5[%c0_12, %c0_13] : memref<32x128xbf16, #tpu.memory_space<vmem>>, vector<32x128xbf16>
    %cst_14 = arith.constant dense<0.000000e+00> : vector<8x128xf32>
    %18 = tpu.matmul %16, %17, %cst_14 {dimension_numbers = #tpu.dot_dimension_numbers<[1], [0], [0], [1], [0, 0, 1, 1], [], []>} : vector<8x32xbf16>, vector<32x128xbf16>, vector<8x128xf32> -> vector<8x128xf32>
    %c0_15 = arith.constant 0 : index
    %c0_16 = arith.constant 0 : index
    %19 = vector.load %arg6[%c0_15, %c0_16] : memref<1x128xf32, #tpu.memory_space<vmem>>, vector<1x128xf32>
    %20 = vector.broadcast %19 : vector<1x128xf32> to vector<8x128xf32>
    %21 = arith.addf %18, %20 : vector<8x128xf32>
    %c0_17 = arith.constant 0 : index
    %c0_18 = arith.constant 0 : index
    %22 = vector.load %arg7[%c0_17, %c0_18] : memref<8x128xf32, #tpu.memory_space<vmem>>, vector<8x128xf32>
    tpu.vector_store %arg7[%c0_17, %c0_18], %21 {strides = array<i32>} : memref<8x128xf32, #tpu.memory_space<vmem>>, vector<8x128xf32>,
    return
  }
}

</mosaic_0001>

<bundles_post_ra>
// kernel: net_forward.1
= control target key start
LH: loop header
LB: loop body
LE: loop exit
PB: predicated region body
PF: predicated region fallthrough
CT: control target
= control target key end

     0   :  { %v277_v0 = vmov 0.0   ;;  %vm278_vm0 = vmmov 0   ;;  %vm43_vm1 = vcmask 130048   ;;  %vm112_vm2 = vcmask 261120   ;;  %s349_s1 = inlined_call_operand.vmem [shape: bf16[16,32], index: 1, kind: input, shape index: {}]   ;;  %s350_s0 = inlined_call_operand.vmem [shape: bf16[8,16], index: 0, kind: input, shape index: {}]   ;;  %s351_s3 = inlined_call_operand.vmem [shape: bf16[32,32], index: 3, kind: input, shape index: {}]   ;;  %s352_s5 = inlined_call_operand.vmem [shape: bf16[32,128], index: 5, kind: input, shape index: {}]   ;;  %s353_s2 = inlined_call_operand.vmem [shape: f32[1,32], index: 2, kind: input, shape index: {}]   ;;  %s354_s4 = inlined_call_operand.vmem [shape: f32[1,32], index: 4, kind: input, shape index: {}]   ;;  %s355_s6 = inlined_call_operand.vmem [shape: f32[1,128], index: 6, kind: input, shape index: {}]   ;;  %s356_s7 = inlined_call_operand.vmem [shape: f32[8,128], index: 7, kind: output, shape index: {}]  }
   0x1   :  { %248 = vmatprep.subr.bf16.mxu0 %v277_v0  ;;  %v272_v1 = vld [vmem:[%s349_s1] sm:$0xff]   ;;  %250 = vmatprep.mubr.msk.bf16.mxu0 %vm278_vm0, %v277_v0  ;;  %v274_v4 = vld [vmem:[%s351_s3 + $0x8] sm:$0xff]  }
   0x2   :  { %254 = vmatprep.subr.bf16.mxu1 %v277_v0  ;;  %258 = vmatprep.mubr.msk.bf16.mxu1 %vm278_vm0, %v277_v0  ;;  %v27_v2 = vld [vmem:[%s350_s0] sm:$0xf]  ;;  %v276_v14 = vld [vmem:[%s352_s5 + $0x8] sm:$0xff]  }
   0x3   :  { %249 = vmatpush3.bf16.msra.mxu0 %v272_v1  ;;  %v273_v3 = vld [vmem:[%s351_s3] sm:$0xff]  }
   0x4   :  { %262 = vmatprep.subr.bf16.mxu0 %v277_v0  ;;  %255 = vmatpush3.bf16.msra.mxu1 %v273_v3  ;;  %v275_v5 = vld [vmem:[%s352_s5] sm:$0xff]  }
   0x5   :  { %256 = vmatprep.subr.bf16.mxu1 %v277_v0  ;;  %v229_v6 = vld [vmem:[%s353_s2] ss:$0 sm:$0xff] }
   0x6   :  { %251 = vmatmul.mubr.msk.bf16.vlgmr.msra.gmra.mrb[0].mxu0 %vm43_vm1, %v27_v2  ;;  %v232_v15 = vld [vmem:[%s354_s4] ss:$0 sm:$0xff] }
   0x7   :  { %266 = vmatprep.mubr.msk.bf16.mxu0 %vm278_vm0, %v277_v0  ;;  %263 = vmatpush3.bf16.msra.mxu0 %v275_v5  ;;  %v236_v23 = vld [vmem:[%s355_s6] ss:$0 sm:$0xff] }
   0x8   :  { %257 = vmatpush3.bf16.msra.mxu1 %v274_v4  ;;  %264 = vmatprep.subr.bf16.mxu0 %v277_v0 }
   0xb   :  { %265 = vmatpush3.bf16.msra.mxu0 %v276_v14 }
  0xd9   :  { %v81_v7 = vpop.f32.mrb[0].mxu0 }
  0xda   :  { %v82_v8 = vadd.f32 %v229_v6, %v81_v7  ;;  %v252_v9 = vpop.f32.mrb[1].mxu0 }
  0xdb   :  { %v84_v10 = vpop.f32.mrb[2].mxu0 }
  0xdc   :  { %v87_v11 = vmax.f32 %v82_v8, 0.0  ;;  %v253_v12 = vpop.f32.mrb[3].mxu0 }
  0xde   :  { %v88_v13 = vpack.c.bf16 %v87_v11, %v87_v11 }
  0xe0   :  { %259 = vmatmul.mubr.msk.bf16.vlgmr.msra.gmra.mrb[0].mxu1 %vm112_vm2, %v88_v13 }
 0x1b3   :  { %v150_v16 = vpop.f32.mrb[0].mxu1 }
 0x1b4   :  { %v151_v17 = vadd.f32 %v232_v15, %v150_v16  ;;  %v260_v18 = vpop.f32.mrb[1].mxu1 }
 0x1b5   :  { %v153_v19 = vpop.f32.mrb[2].mxu1 }
 0x1b6   :  { %v156_v20 = vmax.f32 %v151_v17, 0.0  ;;  %v261_v21 = vpop.f32.mrb[3].mxu1 }
 0x1b8   :  { %v157_v22 = vpack.c.bf16 %v156_v20, %v156_v20 }
 0x1ba   :  { %267 = vmatmul.mubr.msk.bf16.vlgmr.msra.gmra.mrb[4].mxu0 %vm112_vm2, %v157_v22 }
 0x28d   :  { %v218_v24 = vpop.f32.mrb[4].mxu0 }
 0x28e   :  { %v219_v25 = vadd.f32 %v236_v23, %v218_v24  ;;  %v268_v26 = vpop.f32.mrb[5].mxu0 }
 0x28f   :  { %v221_v27 = vpop.f32.mrb[6].mxu0 }
 0x290   :  { %224 = vst [vmem:[%s356_s7] sm:$0xff] %v219_v25  ;;  %v269_v28 = vpop.f32.mrb[7].mxu0 }

</bundles_post_ra>
